<compile_context>
chip_gen: v5e
topology: v5e:2x2
jax: 0.10.0
libtpu: 0.0.40
codegen_flags: <defaults>
</compile_context>

<pallas_src>
import jax
import jax.numpy as jnp
from jax.experimental import pallas as pl
from jax.experimental.pallas import tpu as pltpu

_EPS = 1e-12                 # torch.nn.functional.normalize default eps
_EPS2 = _EPS * _EPS          # clamp applied to the *squared* norm
_VEC_PER_ROW = 128           # vectors packed per lane-dense row
_LANES = 3 * _VEC_PER_ROW    # 384 lanes per packed row (multiple of 128)
_BLOCK_ROWS = 2048           # packed rows per grid step -> 2048*384*4 B = 3 MiB block


def _normalize_kernel(mask_ref, x_ref, o_ref):
    """Block layout: (rows, 384) f32, lanes = [px0,py0,pz0, px1,py1,pz1, ...]."""
    x = x_ref[...]                                   # (blk, 384)
    sq = x * x                                       # VPU

    # Triple sum anchored at the *middle* lane of each (px,py,pz) group.
    # Summing both rotate directions makes this independent of roll's sign
    # convention; lanes with j % 3 != 1 hold garbage and are masked below.
    nbr_a = pltpu.roll(sq, 1, axis=1)                # neighbor one lane away
    nbr_b = pltpu.roll(sq, _LANES - 1, axis=1)       # neighbor, other direction
    mid_sum = sq + nbr_a + nbr_b                     # valid where lane % 3 == 1

    # Keep only the middle-lane sums, then spread each to its two neighbors.
    t = mid_sum * mask_ref[...]                      # mask[0, j] = 1.0 iff j % 3 == 1
    d = t + pltpu.roll(t, 1, axis=1) + pltpu.roll(t, _LANES - 1, axis=1)

    inv_norm = jax.lax.rsqrt(jnp.maximum(d, _EPS2))  # EUP; == 1 / max(||v||, eps)
    o_ref[...] = x * inv_norm


def hailing_direct_norm(x: jax.Array) -> jax.Array:
    """x: [N, 3] float32 direction vectors -> [N, 3] L2-normalized."""
    n, d = x.shape
    assert d == 3, "HailingDirectNorm expects [N, 3] direction vectors"
    orig_n = n

    rem = n % _VEC_PER_ROW
    if rem:
        # Rare ragged path (one extra HBM pass). The intended large-batch case
        # (N % 128 == 0) takes the zero-copy reshape below with no padding.
        x = jnp.pad(x, ((0, _VEC_PER_ROW - rem), (0, 0)))
        n = x.shape[0]

    rows = n // _VEC_PER_ROW
    x_packed = x.reshape(rows, _LANES)      # free: identical row-major bytes
    blk = _BLOCK_ROWS if rows >= _BLOCK_ROWS else rows   # full-extent block if small

    # 1.0 at the middle lane of every (px,py,pz) triple; stays resident in VMEM.
    mask = (jnp.arange(_LANES, dtype=jnp.int32) % 3 == 1).astype(jnp.float32)
    mask = mask.reshape(1, _LANES)

    out = pl.pallas_call(
        _normalize_kernel,
        out_shape=jax.ShapeDtypeStruct((rows, _LANES), x.dtype),
        grid=(pl.cdiv(rows, blk),),
        in_specs=[
            pl.BlockSpec((1, _LANES), lambda i: (0, 0)),      # mask (constant)
            pl.BlockSpec((blk, _LANES), lambda i: (i, 0)),    # packed vectors
        ],
        out_specs=pl.BlockSpec((blk, _LANES), lambda i: (i, 0)),
        compiler_params=pltpu.CompilerParams(
            dimension_semantics=("parallel",),
            vmem_limit_bytes=32 * 1024 * 1024,
        ),
    )(mask, x_packed)

    return out.reshape(-1, 3)[:orig_n]


if __name__ == "__main__":
    # HailingDirectNorm has no learnable parameters.
    key = jax.random.PRNGKey(0)

    def ref_normalize(v):  # same as F.normalize(p=2, dim=1, eps=1e-12)
        return v / jnp.maximum(jnp.sqrt(jnp.sum(v * v, axis=1, keepdims=True)), _EPS)

    # Primary run: small batch, N % 128 == 0 -> zero-copy lane-dense fast path.
    n = 512
    x = jax.random.normal(key, (n, 3), dtype=jnp.float32)
    y = jax.block_until_ready(hailing_direct_norm(x))
    assert y.shape == (n, 3)
    assert jnp.allclose(y, ref_normalize(x), atol=1e-5, rtol=1e-5)

    # Also exercise the ragged (N % 128 != 0) path once.
    x2 = jax.random.normal(jax.random.PRNGKey(0), (37, 3), dtype=jnp.float32)
    y2 = jax.block_until_ready(hailing_direct_norm(x2))
    assert y2.shape == (37, 3)
    assert jnp.allclose(y2, ref_normalize(x2), atol=1e-5, rtol=1e-5)

    print("KERNEL_OK")
</pallas_src>

<mosaic_0001>
module attributes {stable_mosaic.version = 11 : i64} {
  func.func @_normalize_kernel(%arg0: i32, %arg1: memref<1x384xf32, #tpu.memory_space<vmem>>, %arg2: memref<4x384xf32, #tpu.memory_space<vmem>>, %arg3: memref<4x384xf32, #tpu.memory_space<vmem>>) attributes {dimension_semantics = [#tpu.dimension_semantics<parallel>], iteration_bounds = array<i64: 1>, scalar_prefetch = 0 : i64, scratch_operands = 0 : i64, tpu.core_type = #tpu.core_type<tc>, window_params = [{pipeline_mode = #tpu.pipeline_mode<synchronous>, transform_indices = @transform_0, window_bounds = array<i64: 1, 384>}, {transform_indices = @transform_1, window_bounds = array<i64: 4, 384>}, {transform_indices = @transform_2, window_bounds = array<i64: 4, 384>}]} {
    %c0 = arith.constant 0 : index
    %c0_0 = arith.constant 0 : index
    %0 = vector.load %arg2[%c0, %c0_0] : memref<4x384xf32, #tpu.memory_space<vmem>>, vector<4x384xf32>
    %1 = arith.mulf %0, %0 : vector<4x384xf32>
    %c1_i32 = arith.constant 1 : i32
    %2 = tpu.dynamic_rotate %1 by %c1_i32 dim 1 : vector<4x384xf32>, i32 -> vector<4x384xf32>
    %c383_i32 = arith.constant 383 : i32
    %3 = tpu.dynamic_rotate %1 by %c383_i32 dim 1 : vector<4x384xf32>, i32 -> vector<4x384xf32>
    %4 = arith.addf %1, %2 : vector<4x384xf32>
    %5 = arith.addf %4, %3 : vector<4x384xf32>
    %c0_1 = arith.constant 0 : index
    %c0_2 = arith.constant 0 : index
    %6 = vector.load %arg1[%c0_1, %c0_2] : memref<1x384xf32, #tpu.memory_space<vmem>>, vector<1x384xf32>
    %7 = vector.broadcast %6 : vector<1x384xf32> to vector<4x384xf32>
    %8 = arith.mulf %5, %7 : vector<4x384xf32>
    %c1_i32_3 = arith.constant 1 : i32
    %9 = tpu.dynamic_rotate %8 by %c1_i32_3 dim 1 : vector<4x384xf32>, i32 -> vector<4x384xf32>
    %10 = arith.addf %8, %9 : vector<4x384xf32>
    %c383_i32_4 = arith.constant 383 : i32
    %11 = tpu.dynamic_rotate %8 by %c383_i32_4 dim 1 : vector<4x384xf32>, i32 -> vector<4x384xf32>
    %12 = arith.addf %10, %11 : vector<4x384xf32>
    %cst = arith.constant 1.000000e-24 : f32
    %13 = vector.broadcast %cst : f32 to vector<4x384xf32>
    %14 = arith.maximumf %12, %13 : vector<4x384xf32>
    %15 = math.rsqrt %14 : vector<4x384xf32>
    %16 = arith.mulf %0, %15 : vector<4x384xf32>
    %c0_5 = arith.constant 0 : index
    %c0_6 = arith.constant 0 : index
    %17 = vector.load %arg3[%c0_5, %c0_6] : memref<4x384xf32, #tpu.memory_space<vmem>>, vector<4x384xf32>
    tpu.vector_store %arg3[%c0_5, %c0_6], %16 {strides = array<i32>} : memref<4x384xf32, #tpu.memory_space<vmem>>, vector<4x384xf32>,
    return
  }
  func.func @transform_0(%arg0: i32) -> (i32, i32) {
    %c0_i32 = arith.constant 0 : i32
    %c0_i32_0 = arith.constant 0 : i32
    %c0_i32_1 = arith.constant 0 : i32
    return %c0_i32, %c0_i32_0 : i32, i32
  }
  func.func @transform_1(%arg0: i32) -> (i32, i32) {
    %c0_i32 = arith.constant 0 : i32
    %c0_i32_0 = arith.constant 0 : i32
    return %arg0, %c0_i32 : i32, i32
  }
  func.func @transform_2(%arg0: i32) -> (i32, i32) {
    %c0_i32 = arith.constant 0 : i32
    %c0_i32_0 = arith.constant 0 : i32
    return %arg0, %c0_i32 : i32, i32
  }
}

</mosaic_0001>

<bundles_post_ra>
// kernel: tpu_custom_call.1
= control target key start
LH: loop header
LB: loop body
LE: loop exit
PB: predicated region body
PF: predicated region fallthrough
CT: control target
= control target key end

     0   :  { %7 = vsyncpa [#allocation3], 0  ;;  %s379_s0 = inlined_call_operand.hbm [shape: f32[1,384], index: 0, kind: input, shape index: {}]   ;;  %s380_s1 = inlined_call_operand.hbm [shape: f32[4,384], index: 1, kind: input, shape index: {}]   ;;  %s381_s2 = inlined_call_operand.hbm [shape: f32[4,384], index: 2, kind: output, shape index: {}]  }
   0x1   :  { %8 = vsyncpa [#allocation6], 0 }
   0x2   :  { %9 = vsyncpa [#allocation4], 0  ;;  %s15_s11 = sshll.u32 %s379_s0, 4  ;;  %s295_s12 = smov [#allocation2]   ;;  %s16_s11 = int_to_ptr.hbm [resolvable:$true] %s15_s11 }
   0x3   :  { %s17_s13 = sshll.u32 %s295_s12, 4  ;;  %s26_s16 = sshll.u32 %s380_s1, 4  ;;  %s18_s13 = int_to_ptr.vmem [resolvable:$true] %s17_s13  ;;  %s27_s16 = int_to_ptr.hbm [resolvable:$true] %s26_s16 }
   0x4   :  { %20 = dma.hbm_to_vmem [thread:$0]  %s16_s11, 48, %s18_s13, [#allocation3]  }
   0x5   :  { %s296_s17 = smov [#allocation5]  }
   0x6   :  { %s28_s18 = sshll.u32 %s296_s17, 4  ;;  %s29_s18 = int_to_ptr.vmem [resolvable:$true] %s28_s18 }
   0x7   :  { %31 = dma.hbm_to_vmem [thread:$0]  %s27_s16, 192, %s29_s18, [#allocation6]  }
   0x8   :  { %289 = dma.done.wait [#allocation3], 48  }
   0x9   :  { %290 = vsyncadd [#allocation3], 4294967248 }
   0xa   :  { %291 = dma.done.wait [#allocation6], 192  }
   0xb   :  { %292 = vsyncadd [#allocation6], 4294967104  ;;  %v321_v0 = vld [vmem:[#allocation5 + $0x8] sm:$0xf]  ;;  %v323_v1 = vld [vmem:[#allocation5] sm:$0xff]  ;;  %s297_s0 = smov 1   ;;  %v61_v12 = vlaneseq }
   0xc   :  { %v43_v2 = vmul.f32 %v321_v0, %v321_v0  ;;  %v42_v3 = vmul.f32 %v323_v1, %v323_v1  ;;  %s298_s1 = smov 127   ;;  %v101_v14 = vld [vmem:[#allocation2] sm:$0x7]  ;;  %vm89_vm2 = vcmask 1043456   ;;  %s299_s19 = smov [#allocation7]  }
   0xd   :  { %v335_v15 = vand.u32 127, %v61_v12  ;;  %v104_v16 = vperm.slane %v101_v14, 1  ;;  %v105_v19 = vperm.slane %v101_v14, 2  ;;  %v103_v22 = vperm.slane %v101_v14, 0  ;;  %s195_s20 = sshll.u32 %s299_s19, 4  ;;  %s197_s23 = sshll.u32 %s381_s2, 4  ;;  %s196_s20 = int_to_ptr.vmem [resolvable:$true] %s195_s20  ;;  %s198_s23 = int_to_ptr.hbm [resolvable:$true] %s197_s23 }
   0xe   :  { %48 = vst [vmem:[#allocation1 + $0x10] ss:$2 sm:$0xff] %v43_v2 }
   0xf   :  { %46 = vst [vmem:[#allocation1] ss:$2 sm:$0xff] %v42_v3  ;;  %vm63_vm0 = vcmp.lt.s32.totalorder %v335_v15, 1  ;;  %vm82_vm1 = vcmp.lt.s32.totalorder %v335_v15, 127  ;;  %v107_v26 = vrot.slane %v104_v16, 4 }
  0x11   :  { %v108_v36 = vsel %vm89_vm2, %v103_v22, %v107_v26 }
  0x15   :  { %v51_v4 = vld.sshfl [vmem:[#allocation1 + $0x10] sm:$0xff pattern:$0x75316420] }
  0x16   :  { %59 = vrot.lane.b32.xlu1 %v51_v4, %s297_s0  ;;  %69 = vst [vmem:[#allocation1 + $0x10] ss:$2 sm:$0xff] %v43_v2  ;;  %v49_v5 = vld.sshfl [vmem:[#allocation1] sm:$0xff pattern:$0x75316420] }
  0x17   :  { %55 = vrot.lane.b32.xlu0 %v49_v5, %s297_s0  ;;  %v50_v6 = vld.sshfl [vmem:[#allocation1 + $0x8] sm:$0xff pattern:$0x75316420] }
  0x18   :  { %67 = vst [vmem:[#allocation1] ss:$2 sm:$0xff] %v42_v3 }
  0x1d   :  { %v72_v7 = vld.sshfl [vmem:[#allocation1 + $0x10] sm:$0xff pattern:$0x75316420] }
  0x1e   :  { %80 = vrot.lane.b32.xlu2 %v72_v7, %s298_s1 }
  0x1f   :  { %57 = vrot.lane.b32.xlu0 %v50_v6, %s297_s0  ;;  %v71_v8 = vld.sshfl [vmem:[#allocation1 + $0x8] sm:$0xff pattern:$0x75316420]  ;;  %v70_v9 = vld.sshfl [vmem:[#allocation1] sm:$0xff pattern:$0x75316420] }
  0x20   :  { %78 = vrot.lane.b32.xlu1 %v71_v8, %s298_s1 }
  0x26   :  { %76 = vrot.lane.b32.xlu2 %v70_v9, %s298_s1 }
  0x78   :  { %v81_v10 = vpop.permute.xlu2 %80 }
  0x80   :  { %v77_v17 = vpop.permute.xlu2 %76 }
  0x81   :  { %v85_v29 = vsel %vm82_vm1, %v81_v10, %v77_v17 }
  0x88   :  { %v60_v11 = vpop.permute.xlu1 %59 }
  0x89   :  { %v56_v13 = vpop.permute.xlu0 %55 }
  0x8a   :  { %v66_v28 = vsel %vm63_vm0, %v60_v11, %v56_v13 }
  0x91   :  { %v58_v18 = vpop.permute.xlu0 %57 }
  0x92   :  { %v64_v20 = vsel %vm63_vm0, %v58_v18, %v60_v11  ;;  %v65_v21 = vsel %vm63_vm0, %v56_v13, %v58_v18  ;;  %v79_v23 = vpop.permute.xlu1 %78 }
  0x93   :  { %v88_v24 = vrot.slane %v65_v21, 4  ;;  %v93_v25 = vadd.f32 %v64_v20, %v43_v2  ;;  %v83_v27 = vsel %vm82_vm1, %v79_v23, %v81_v10  ;;  %v84_v30 = vsel %vm82_vm1, %v77_v17, %v79_v23 }
  0x94   :  { %v96_v31 = vrot.slane %v83_v27, 4 }
  0x95   :  { %v90_v32 = vsel %vm89_vm2, %v66_v28, %v88_v24  ;;  %v100_v33 = vadd.f32 %v93_v25, %v85_v29 }
  0x96   :  { %v92_v34 = vadd.f32 %v90_v32, %v42_v3  ;;  %v97_v37 = vsel %vm89_vm2, %v84_v30, %v96_v31 }
  0x97   :  { %v111_v35 = vmul.f32 %v105_v19, %v100_v33 }
  0x98   :  { %v99_v38 = vadd.f32 %v97_v37, %v92_v34 }
  0x99   :  { %116 = vst [vmem:[#allocation1 + $0x10] ss:$2 sm:$0xff] %v111_v35 }
  0x9a   :  { %v110_v39 = vmul.f32 %v108_v36, %v99_v38 }
  0x9c   :  { %114 = vst [vmem:[#allocation1] ss:$2 sm:$0xff] %v110_v39 }
  0xa0   :  { %v119_v40 = vld.sshfl [vmem:[#allocation1 + $0x10] sm:$0xff pattern:$0x75316420] }
  0xa1   :  { %127 = vrot.lane.b32.xlu2 %v119_v40, %s297_s0  ;;  %141 = vst [vmem:[#allocation1 + $0x10] ss:$2 sm:$0xff] %v111_v35 }
  0xa3   :  { %v118_v41 = vld.sshfl [vmem:[#allocation1 + $0x8] sm:$0xff pattern:$0x75316420]  ;;  %v117_v42 = vld.sshfl [vmem:[#allocation1] sm:$0xff pattern:$0x75316420] }
  0xa4   :  { %125 = vrot.lane.b32.xlu1 %v118_v41, %s297_s0  ;;  %123 = vrot.lane.b32.xlu0 %v117_v42, %s297_s0  ;;  %139 = vst [vmem:[#allocation1] ss:$2 sm:$0xff] %v110_v39 }
  0xa8   :  { %v144_v43 = vld.sshfl [vmem:[#allocation1 + $0x10] sm:$0xff pattern:$0x75316420] }
  0xab   :  { %v143_v44 = vld.sshfl [vmem:[#allocation1 + $0x8] sm:$0xff pattern:$0x75316420]  ;;  %v142_v45 = vld.sshfl [vmem:[#allocation1] sm:$0xff pattern:$0x75316420] }
  0xac   :  { %152 = vrot.lane.b32.xlu1 %v144_v43, %s298_s1  ;;  %150 = vrot.lane.b32.xlu0 %v143_v44, %s298_s1 }
  0xad   :  { %148 = vrot.lane.b32.xlu2 %v142_v45, %s298_s1 }
  0xfb   :  { %v128_v46 = vpop.permute.xlu2 %127 }
 0x107   :  { %v149_v52 = vpop.permute.xlu2 %148 }
 0x116   :  { %v126_v47 = vpop.permute.xlu1 %125  ;;  %v124_v48 = vpop.permute.xlu0 %123 }
 0x117   :  { %v130_v49 = vsel %vm63_vm0, %v124_v48, %v126_v47  ;;  %v129_v51 = vsel %vm63_vm0, %v126_v47, %v128_v46  ;;  %v131_v53 = vsel %vm63_vm0, %v128_v46, %v124_v48 }
 0x118   :  { %v134_v50 = vrot.slane %v130_v49, 4  ;;  %v138_v54 = vadd.f32 %v129_v51, %v111_v35 }
 0x11a   :  { %v135_v55 = vsel %vm89_vm2, %v131_v53, %v134_v50 }
 0x11b   :  { %v137_v62 = vadd.f32 %v135_v55, %v110_v39 }
 0x11e   :  { %v153_v56 = vpop.permute.xlu1 %152  ;;  %v151_v57 = vpop.permute.xlu0 %150 }
 0x11f   :  { %v156_v58 = vsel %vm82_vm1, %v153_v56, %v149_v52  ;;  %v154_v59 = vsel %vm82_vm1, %v151_v57, %v153_v56  ;;  %v155_v63 = vsel %vm82_vm1, %v149_v52, %v151_v57 }
 0x120   :  { %v163_v60 = vadd.f32 %v156_v58, %v138_v54  ;;  %v159_v61 = vrot.slane %v154_v59, 4 }
 0x122   :  { %v165_v2 = vmax.f32 %v163_v60, 1e-24  ;;  %v160_v3 = vsel %vm89_vm2, %v155_v63, %v159_v61 }
 0x123   :  { %v162_v4 = vadd.f32 %v160_v3, %v137_v62 }
 0x124   :  { %213 = vrsqrt.f32 %v165_v2  ;;  %vm182_vm4 = vweird.f32 %v165_v2 }
 0x125   :  { %v164_v5 = vmax.f32 %v162_v4, 1e-24 }
 0x127   :  { %215 = vrsqrt.f32 %v164_v5  ;;  %vm172_vm7 = vweird.f32 %v164_v5 }
 0x12a   :  { %v214_v6 = vpop.eup %213 }
 0x12b   :  { %v177_v7 = vmul.f32 %v214_v6, %v165_v2  ;;  %vm183_vm3 = vweird.f32 %v214_v6 }
 0x12c   :  { %vm184_vm5 = vmor %vm182_vm4, %vm183_vm3 }
 0x12d   :  { %v216_v8 = vpop.eup %215  ;;  %v178_v9 = vmul.f32 %v214_v6, %v177_v7 }
 0x12e   :  { %v167_v10 = vmul.f32 %v216_v8, %v164_v5  ;;  %vm173_vm6 = vweird.f32 %v216_v8 }
 0x12f   :  { %v179_v11 = vmul.f32 0.5, %v178_v9  ;;  %vm174_vm8 = vmor %vm172_vm7, %vm173_vm6 }
 0x130   :  { %v168_v12 = vmul.f32 %v216_v8, %v167_v10 }
 0x131   :  { %v180_v13 = vsub.f32 1.5, %v179_v11 }
 0x132   :  { %v169_v14 = vmul.f32 0.5, %v168_v12 }
 0x133   :  { %v181_v16 = vmul.f32 %v214_v6, %v180_v13 }
 0x134   :  { %v170_v15 = vsub.f32 1.5, %v169_v14 }
 0x135   :  { %v185_v17 = vsel %vm184_vm5, %v214_v6, %v181_v16 }
 0x136   :  { %v171_v18 = vmul.f32 %v216_v8, %v170_v15  ;;  %v187_v19 = vmul.f32 %v185_v17, %v321_v0 }
 0x138   :  { %v175_v20 = vsel %vm174_vm8, %v216_v8, %v171_v18  ;;  %189 = vst [vmem:[#allocation7 + $0x8] sm:$0xf] %v187_v19 }
 0x139   :  { %v186_v21 = vmul.f32 %v175_v20, %v323_v1 }
 0x13b   :  { %188 = vst [vmem:[#allocation7] sm:$0xff] %v186_v21 }
 0x13c   :  { %200 = dma.vmem_to_hbm [thread:$0]  %s196_s20, 192, %s198_s23, [#allocation4]  }
 0x13d   :  { %293 = dma.done.wait [#allocation4], 192  }
 0x13e   :  { %294 = vsyncadd [#allocation4], 4294967104 }
 0x13f   :  { %205 = vsyncpa [#allocation3], 1 }
 0x140   :  { %206 = vsyncpa [#allocation6], 1 }
 0x141   :  { %207 = vsyncpa [#allocation4], 1 }

</bundles_post_ra>
